<compile_context>
chip_gen: v6e
topology: v6e:2x2x1
jax: 0.10.0
libtpu: 0.0.40
codegen_flags: <defaults>
</compile_context>

<pallas_src>
import math

import jax
import jax.numpy as jnp
from jax.experimental import pallas as pl
from jax.experimental.pallas import tpu as pltpu

IN_DIM = 16     # input features
HIDDEN = 100    # "largeur" in the PyTorch module
OUT_DIM = 3     # output features
HID_PAD = 128   # hidden width padded to a full lane tile
OUT_PAD = 128   # output width padded to a full lane tile (lane-dense stores)


def _mlp3_kernel(x_ref, w1_ref, b1_ref, w2_ref, b2_ref, w3_ref, b3_ref, o_ref):
    x = x_ref[...]                                                    # [TB, 16]
    h1 = jnp.dot(x, w1_ref[...], preferred_element_type=jnp.float32)
    h1 = jnp.maximum(h1 + b1_ref[...], 0.0)                           # [TB, 128]
    h2 = jnp.dot(h1, w2_ref[...], preferred_element_type=jnp.float32)
    h2 = jnp.maximum(h2 + b2_ref[...], 0.0)                           # [TB, 128]
    out = jnp.dot(h2, w3_ref[...], preferred_element_type=jnp.float32)
    o_ref[...] = (out + b3_ref[...]).astype(o_ref.dtype)              # [TB, 128]


def nn_3j_forward(x, params, *, tb=128):
    """x: [B, 16] float32 -> [B, 3] float32.

    `tb` is the batch tile; weights stay resident in VMEM across the batch
    grid, x/out blocks are double-buffered by the Pallas pipeline.
    """
    w1, b1, w2, b2, w3, b3 = params
    B = x.shape[0]
    b_pad = pl.cdiv(B, tb) * tb
    if b_pad != B:
        x = jnp.pad(x, ((0, b_pad - B), (0, 0)))

    grid = (b_pad // tb,)

    # Weights/biases: full-array blocks, constant index_map -> resident in
    # VMEM for the whole call (loaded once, reused every batch tile).
    resident = lambda shape: pl.BlockSpec(shape, lambda i: (0, 0))

    cost = pl.CostEstimate(
        flops=2 * b_pad * (IN_DIM * HID_PAD + HID_PAD * HID_PAD + HID_PAD * OUT_PAD),
        transcendentals=0,
        bytes_accessed=4 * (
            b_pad * IN_DIM                       # x
            + IN_DIM * HID_PAD + HID_PAD         # w1, b1
            + HID_PAD * HID_PAD + HID_PAD        # w2, b2
            + HID_PAD * OUT_PAD + OUT_PAD        # w3, b3
            + b_pad * OUT_PAD                    # out
        ),
    )

    out = pl.pallas_call(
        _mlp3_kernel,
        out_shape=jax.ShapeDtypeStruct((b_pad, OUT_PAD), jnp.float32),
        grid=grid,
        in_specs=[
            pl.BlockSpec((tb, IN_DIM), lambda i: (i, 0)),   # x: tiled over batch
            resident((IN_DIM, HID_PAD)),                    # w1
            resident((1, HID_PAD)),                         # b1
            resident((HID_PAD, HID_PAD)),                   # w2
            resident((1, HID_PAD)),                         # b2
            resident((HID_PAD, OUT_PAD)),                   # w3
            resident((1, OUT_PAD)),                         # b3
        ],
        out_specs=pl.BlockSpec((tb, OUT_PAD), lambda i: (i, 0)),
        compiler_params=pltpu.CompilerParams(
            dimension_semantics=("parallel",),
        ),
        cost_estimate=cost,
    )(x, w1, b1, w2, b2, w3, b3)

    return out[:B, :OUT_DIM]


def init_params(key):
    """nn.Linear-style uniform(-1/sqrt(fan_in), ...) init, zero-padded to lane tiles."""
    dims = [(IN_DIM, HIDDEN), (HIDDEN, HIDDEN), (HIDDEN, OUT_DIM)]
    pads = [(IN_DIM, HID_PAD), (HID_PAD, HID_PAD), (HID_PAD, OUT_PAD)]
    params = []
    for (fi, fo), (pi, po) in zip(dims, pads):
        key, kw, kb = jax.random.split(key, 3)
        bound = 1.0 / math.sqrt(fi)
        # weight stored as [in, out] (transposed vs. PyTorch's [out, in])
        w = jax.random.uniform(kw, (fi, fo), jnp.float32, -bound, bound)
        b = jax.random.uniform(kb, (1, fo), jnp.float32, -bound, bound)
        # zero-pad to lane-aligned shapes; padded rows/cols stay exactly 0 so the
        # padded compute matches the logical 16->100->100->3 network exactly.
        w_pad = jnp.zeros((pi, po), jnp.float32).at[:fi, :fo].set(w)
        b_pad = jnp.zeros((1, po), jnp.float32).at[:, :fo].set(b)
        params.extend([w_pad, b_pad])
    return tuple(params)


def reference_forward(x, params):
    """Pure-JAX reference on the *unpadded* logical weights."""
    w1, b1, w2, b2, w3, b3 = params
    w1, b1 = w1[:IN_DIM, :HIDDEN], b1[:, :HIDDEN]
    w2, b2 = w2[:HIDDEN, :HIDDEN], b2[:, :HIDDEN]
    w3, b3 = w3[:HIDDEN, :OUT_DIM], b3[:, :OUT_DIM]
    h1 = jnp.maximum(x @ w1 + b1, 0.0)
    h2 = jnp.maximum(h1 @ w2 + b2, 0.0)
    return h2 @ w3 + b3


if __name__ == "__main__":
    key = jax.random.PRNGKey(0)
    key, kx = jax.random.split(key)

    batch = 8
    x = jax.random.normal(kx, (batch, IN_DIM), jnp.float32)
    params = init_params(key)

    out = nn_3j_forward(x, params)
    out = jax.block_until_ready(out)

    ref = reference_forward(x, params)
    assert out.shape == (batch, OUT_DIM), out.shape
    assert jnp.allclose(out, ref, atol=1e-4, rtol=1e-4), "mismatch vs reference"

    print("KERNEL_OK")
</pallas_src>

<mosaic_0001>
module attributes {stable_mosaic.version = 11 : i64} {
  func.func @_mlp3_kernel(%arg0: i32, %arg1: memref<128x16xf32, #tpu.memory_space<vmem>>, %arg2: memref<16x128xf32, #tpu.memory_space<vmem>>, %arg3: memref<1x128xf32, #tpu.memory_space<vmem>>, %arg4: memref<128x128xf32, #tpu.memory_space<vmem>>, %arg5: memref<1x128xf32, #tpu.memory_space<vmem>>, %arg6: memref<128x128xf32, #tpu.memory_space<vmem>>, %arg7: memref<1x128xf32, #tpu.memory_space<vmem>>, %arg8: memref<128x128xf32, #tpu.memory_space<vmem>>) attributes {dimension_semantics = [#tpu.dimension_semantics<parallel>], iteration_bounds = array<i64: 1>, scalar_prefetch = 0 : i64, scratch_operands = 0 : i64, tpu.core_type = #tpu.core_type<tc>, window_params = [{transform_indices = @transform_0, window_bounds = array<i64: 128, 16>}, {pipeline_mode = #tpu.pipeline_mode<synchronous>, transform_indices = @transform_1, window_bounds = array<i64: 16, 128>}, {pipeline_mode = #tpu.pipeline_mode<synchronous>, transform_indices = @transform_2, window_bounds = array<i64: 1, 128>}, {pipeline_mode = #tpu.pipeline_mode<synchronous>, transform_indices = @transform_3, window_bounds = array<i64: 128, 128>}, {pipeline_mode = #tpu.pipeline_mode<synchronous>, transform_indices = @transform_4, window_bounds = array<i64: 1, 128>}, {pipeline_mode = #tpu.pipeline_mode<synchronous>, transform_indices = @transform_5, window_bounds = array<i64: 128, 128>}, {pipeline_mode = #tpu.pipeline_mode<synchronous>, transform_indices = @transform_6, window_bounds = array<i64: 1, 128>}, {transform_indices = @transform_7, window_bounds = array<i64: 128, 128>}]} {
    %c0 = arith.constant 0 : index
    %c0_0 = arith.constant 0 : index
    %0 = vector.load %arg1[%c0, %c0_0] : memref<128x16xf32, #tpu.memory_space<vmem>>, vector<128x16xf32>
    %c0_1 = arith.constant 0 : index
    %c0_2 = arith.constant 0 : index
    %1 = vector.load %arg2[%c0_1, %c0_2] : memref<16x128xf32, #tpu.memory_space<vmem>>, vector<16x128xf32>
    %cst = arith.constant dense<0.000000e+00> : vector<128x128xf32>
    %2 = tpu.matmul %0, %1, %cst {dimension_numbers = #tpu.dot_dimension_numbers<[1], [0], [0], [1], [0, 0, 1, 1], [], []>} : vector<128x16xf32>, vector<16x128xf32>, vector<128x128xf32> -> vector<128x128xf32>
    %c0_3 = arith.constant 0 : index
    %c0_4 = arith.constant 0 : index
    %3 = vector.load %arg3[%c0_3, %c0_4] : memref<1x128xf32, #tpu.memory_space<vmem>>, vector<1x128xf32>
    %4 = vector.broadcast %3 : vector<1x128xf32> to vector<128x128xf32>
    %5 = arith.addf %2, %4 : vector<128x128xf32>
    %cst_5 = arith.constant 0.000000e+00 : f32
    %6 = vector.broadcast %cst_5 : f32 to vector<128x128xf32>
    %7 = arith.maximumf %5, %6 : vector<128x128xf32>
    %c0_6 = arith.constant 0 : index
    %c0_7 = arith.constant 0 : index
    %8 = vector.load %arg4[%c0_6, %c0_7] : memref<128x128xf32, #tpu.memory_space<vmem>>, vector<128x128xf32>
    %cst_8 = arith.constant dense<0.000000e+00> : vector<128x128xf32>
    %9 = tpu.matmul %7, %8, %cst_8 {dimension_numbers = #tpu.dot_dimension_numbers<[1], [0], [0], [1], [0, 0, 1, 1], [], []>} : vector<128x128xf32>, vector<128x128xf32>, vector<128x128xf32> -> vector<128x128xf32>
    %c0_9 = arith.constant 0 : index
    %c0_10 = arith.constant 0 : index
    %10 = vector.load %arg5[%c0_9, %c0_10] : memref<1x128xf32, #tpu.memory_space<vmem>>, vector<1x128xf32>
    %11 = vector.broadcast %10 : vector<1x128xf32> to vector<128x128xf32>
    %12 = arith.addf %9, %11 : vector<128x128xf32>
    %cst_11 = arith.constant 0.000000e+00 : f32
    %13 = vector.broadcast %cst_11 : f32 to vector<128x128xf32>
    %14 = arith.maximumf %12, %13 : vector<128x128xf32>
    %c0_12 = arith.constant 0 : index
    %c0_13 = arith.constant 0 : index
    %15 = vector.load %arg6[%c0_12, %c0_13] : memref<128x128xf32, #tpu.memory_space<vmem>>, vector<128x128xf32>
    %cst_14 = arith.constant dense<0.000000e+00> : vector<128x128xf32>
    %16 = tpu.matmul %14, %15, %cst_14 {dimension_numbers = #tpu.dot_dimension_numbers<[1], [0], [0], [1], [0, 0, 1, 1], [], []>} : vector<128x128xf32>, vector<128x128xf32>, vector<128x128xf32> -> vector<128x128xf32>
    %c0_15 = arith.constant 0 : index
    %c0_16 = arith.constant 0 : index
    %17 = vector.load %arg7[%c0_15, %c0_16] : memref<1x128xf32, #tpu.memory_space<vmem>>, vector<1x128xf32>
    %18 = vector.broadcast %17 : vector<1x128xf32> to vector<128x128xf32>
    %19 = arith.addf %16, %18 : vector<128x128xf32>
    %c0_17 = arith.constant 0 : index
    %c0_18 = arith.constant 0 : index
    %20 = vector.load %arg8[%c0_17, %c0_18] : memref<128x128xf32, #tpu.memory_space<vmem>>, vector<128x128xf32>
    tpu.vector_store %arg8[%c0_17, %c0_18], %19 {strides = array<i32>} : memref<128x128xf32, #tpu.memory_space<vmem>>, vector<128x128xf32>,
    return
  }
  func.func @transform_0(%arg0: i32) -> (i32, i32) {
    %c0_i32 = arith.constant 0 : i32
    %c0_i32_0 = arith.constant 0 : i32
    return %arg0, %c0_i32 : i32, i32
  }
  func.func @transform_1(%arg0: i32) -> (i32, i32) {
    %c0_i32 = arith.constant 0 : i32
    %c0_i32_0 = arith.constant 0 : i32
    %c0_i32_1 = arith.constant 0 : i32
    return %c0_i32, %c0_i32_0 : i32, i32
  }
  func.func @transform_2(%arg0: i32) -> (i32, i32) {
    %c0_i32 = arith.constant 0 : i32
    %c0_i32_0 = arith.constant 0 : i32
    %c0_i32_1 = arith.constant 0 : i32
    return %c0_i32, %c0_i32_0 : i32, i32
  }
  func.func @transform_3(%arg0: i32) -> (i32, i32) {
    %c0_i32 = arith.constant 0 : i32
    %c0_i32_0 = arith.constant 0 : i32
    %c0_i32_1 = arith.constant 0 : i32
    return %c0_i32, %c0_i32_0 : i32, i32
  }
  func.func @transform_4(%arg0: i32) -> (i32, i32) {
    %c0_i32 = arith.constant 0 : i32
    %c0_i32_0 = arith.constant 0 : i32
    %c0_i32_1 = arith.constant 0 : i32
    return %c0_i32, %c0_i32_0 : i32, i32
  }
  func.func @transform_5(%arg0: i32) -> (i32, i32) {
    %c0_i32 = arith.constant 0 : i32
    %c0_i32_0 = arith.constant 0 : i32
    %c0_i32_1 = arith.constant 0 : i32
    return %c0_i32, %c0_i32_0 : i32, i32
  }
  func.func @transform_6(%arg0: i32) -> (i32, i32) {
    %c0_i32 = arith.constant 0 : i32
    %c0_i32_0 = arith.constant 0 : i32
    %c0_i32_1 = arith.constant 0 : i32
    return %c0_i32, %c0_i32_0 : i32, i32
  }
  func.func @transform_7(%arg0: i32) -> (i32, i32) {
    %c0_i32 = arith.constant 0 : i32
    %c0_i32_0 = arith.constant 0 : i32
    return %arg0, %c0_i32 : i32, i32
  }
}

</mosaic_0001>

<bundles_post_ra>
// kernel: tpu_custom_call.1
= control target key start
LH: loop header
LB: loop body
LE: loop exit
PB: predicated region body
PF: predicated region fallthrough
CT: control target
= control target key end

     0   :  { %12 = vsyncpa [#allocation3], 0  ;;  %s1133_s0 = inlined_call_operand.vmem [shape: f32[128,16], index: 0, kind: input, shape index: {}]   ;;  %s1134_s1 = inlined_call_operand.vmem [shape: f32[16,128], index: 1, kind: input, shape index: {}]   ;;  %s1135_s2 = inlined_call_operand.vmem [shape: f32[1,128], index: 2, kind: input, shape index: {}]   ;;  %s1136_s3 = inlined_call_operand.vmem [shape: f32[128,128], index: 3, kind: input, shape index: {}]   ;;  %s1137_s4 = inlined_call_operand.vmem [shape: f32[1,128], index: 4, kind: input, shape index: {}]   ;;  %s1138_s5 = inlined_call_operand.hbm [shape: f32[128,128], index: 5, kind: input, shape index: {}]   ;;  %s1139_s6 = inlined_call_operand.vmem [shape: f32[1,128], index: 6, kind: input, shape index: {}]   ;;  %s1140_s7 = inlined_call_operand.hbm [shape: f32[128,128], index: 7, kind: output, shape index: {}]  }
   0x1   :  { %13 = vsyncpa [#allocation4], 0  ;;  %s950_s24 = smov [#allocation2]  }
   0x2   :  { %s29_s25 = sshll.u32 %s950_s24, 4  ;;  %s30_s25 = int_to_ptr.vmem [resolvable:$true] %s29_s25 }
   0x3   :  { %s914_s26 = scalar_lea.vmem %s30_s25, 2048  ;;  %p919_p1 = scmp.lt.s32.totalorder %s30_s25, %s30_s25 }
   0x4   :  { %p915_p0 = scmp.ne.s32.totalorder %s30_s25, %s914_s26  ;;  %p920_p2 = scmp.lt.s32.totalorder %s914_s26, %s914_s26 }
   0x6   :  { %p921_p3 = por %p920_p2, %p919_p1 }
   0x8   :  { %p922_p4 = pnand %p921_p3, %p915_p0 }
   0xa   :  { %925 = shalt.err (!%p922_p4)
}
   0xb   :  { %s951_s27 = smov 128   ;;  %s952_s28 = smov 8  }
   0xc   :  { %35 = dma.hbm_to_vmem [thread:$0]  %s1138_s5, 2048, %s30_s25, [#allocation3], %s951_s27, %s951_s27, %s952_s28  }
   0xd   :  { %946 = dma.done.wait [#allocation3], 2048  }
   0xe   :  { %947 = vsyncadd [#allocation3], 4294965248  ;;  %vm66_vm0 = vcmask 130048   ;;  %v58_v0 = vld [vmem:[%s1134_s1 + $0x8] sm:$0xff]  ;;  %v57_v1 = vld [vmem:[%s1134_s1] sm:$0xff] }
   0xf   :  { %v41_v2 = vld [vmem:[%s1133_s0] sm:$0xff]  ;;  %762 = vmatprep.subr.mxu0 %v58_v0  ;;  %v42_v3 = vld [vmem:[%s1133_s0 + $0x8] sm:$0xff]  ;;  %v43_v4 = vld [vmem:[%s1133_s0 + $0x10] sm:$0xff] }
  0x10   :  { %766 = vmatprep.mubr.msk.f32.mxu0 %vm66_vm0, %v41_v2  ;;  %763 = vmatpush3.msra.mxu0 %v58_v0  ;;  %v44_v5 = vld [vmem:[%s1133_s0 + $0x18] sm:$0xff]  ;;  %v290_v7 = vld [vmem:[%s1136_s3 + $0x70] sm:$0xff]  ;;  %v45_v8 = vld [vmem:[%s1133_s0 + $0x20] sm:$0xff] }
  0x11   :  { %764 = vmatprep.subr.mxu0 %v57_v1  ;;  %v291_v6 = vld [vmem:[%s1136_s3 + $0x78] sm:$0xff]  ;;  %v289_v9 = vld [vmem:[%s1136_s3 + $0x68] sm:$0xff]  ;;  %v288_v11 = vld [vmem:[%s1136_s3 + $0x60] sm:$0xff] }
  0x12   :  { %765 = vmatpush3.msra.mxu0 %v57_v1  ;;  %790 = vmatprep.subr.mxu1 %v291_v6  ;;  %v46_v10 = vld [vmem:[%s1133_s0 + $0x28] sm:$0xff]  ;;  %v47_v12 = vld [vmem:[%s1133_s0 + $0x30] sm:$0xff]  ;;  %v287_v13 = vld [vmem:[%s1136_s3 + $0x58] sm:$0xff] }
  0x13   :  { %767 = vmatmul.mubr.msk.f32.vlgmr.msra.gmra.mxu0 %vm66_vm0, %v42_v3  ;;  %791 = vmatpush3.msra.mxu1 %v291_v6  ;;  %v48_v14 = vld [vmem:[%s1133_s0 + $0x38] sm:$0xff]  ;;  %v286_v15 = vld [vmem:[%s1136_s3 + $0x50] sm:$0xff]  ;;  %v49_v16 = vld [vmem:[%s1133_s0 + $0x40] sm:$0xff] }
  0x14   :  { %769 = vmatprep.mubr.msk.f32.mxu0 %vm66_vm0, %v43_v4  ;;  %792 = vmatprep.subr.mxu1 %v290_v7  ;;  %v285_v17 = vld [vmem:[%s1136_s3 + $0x48] sm:$0xff]  ;;  %v284_v19 = vld [vmem:[%s1136_s3 + $0x40] sm:$0xff]  ;;  %v51_v20 = vld [vmem:[%s1133_s0 + $0x50] sm:$0xff] }
  0x15   :  { %793 = vmatpush3.msra.mxu1 %v290_v7  ;;  %v50_v18 = vld [vmem:[%s1133_s0 + $0x48] sm:$0xff]  ;;  %v283_v21 = vld [vmem:[%s1136_s3 + $0x38] sm:$0xff]  ;;  %v282_v23 = vld [vmem:[%s1136_s3 + $0x30] sm:$0xff] }
  0x16   :  { %794 = vmatprep.subr.mxu1 %v289_v9  ;;  %v52_v22 = vld [vmem:[%s1133_s0 + $0x58] sm:$0xff]  ;;  %v53_v24 = vld [vmem:[%s1133_s0 + $0x60] sm:$0xff]  ;;  %v281_v25 = vld [vmem:[%s1136_s3 + $0x28] sm:$0xff] }
  0x17   :  { %770 = vmatmul.mubr.msk.f32.gmra.mxu0 %vm66_vm0, %v44_v5  ;;  %795 = vmatpush3.msra.mxu1 %v289_v9  ;;  %v54_v26 = vld [vmem:[%s1133_s0 + $0x68] sm:$0xff]  ;;  %v280_v27 = vld [vmem:[%s1136_s3 + $0x20] sm:$0xff]  ;;  %v55_v28 = vld [vmem:[%s1133_s0 + $0x70] sm:$0xff] }
  0x18   :  { %772 = vmatprep.mubr.msk.f32.mxu0 %vm66_vm0, %v45_v8  ;;  %796 = vmatprep.subr.mxu1 %v288_v11  ;;  %v56_v29 = vld [vmem:[%s1133_s0 + $0x78] sm:$0xff]  ;;  %v278_v31 = vld [vmem:[%s1136_s3 + $0x10] sm:$0xff]  ;;  %v277_v32 = vld [vmem:[%s1136_s3 + $0x8] sm:$0xff] }
  0x19   :  { %797 = vmatpush3.msra.mxu1 %v288_v11  ;;  %v279_v30 = vld [vmem:[%s1136_s3 + $0x18] sm:$0xff]  ;;  %v276_v33 = vld [vmem:[%s1136_s3] sm:$0xff]  ;;  %v474_v35 = vld [vmem:[#allocation2 + $0x70] sm:$0xff] }
  0x1a   :  { %798 = vmatprep.subr.mxu1 %v287_v13  ;;  %v475_v34 = vld [vmem:[#allocation2 + $0x78] sm:$0xff]  ;;  %v473_v36 = vld [vmem:[#allocation2 + $0x68] sm:$0xff]  ;;  %v472_v37 = vld [vmem:[#allocation2 + $0x60] sm:$0xff] }
  0x1b   :  { %773 = vmatmul.mubr.msk.f32.gmra.mxu0 %vm66_vm0, %v46_v10  ;;  %799 = vmatpush3.msra.mxu1 %v287_v13  ;;  %v471_v38 = vld [vmem:[#allocation2 + $0x58] sm:$0xff]  ;;  %v470_v39 = vld [vmem:[#allocation2 + $0x50] sm:$0xff]  ;;  %v469_v40 = vld [vmem:[#allocation2 + $0x48] sm:$0xff] }
  0x1c   :  { %775 = vmatprep.mubr.msk.f32.mxu0 %vm66_vm0, %v47_v12  ;;  %800 = vmatprep.subr.mxu1 %v286_v15  ;;  %v468_v41 = vld [vmem:[#allocation2 + $0x40] sm:$0xff]  ;;  %v467_v42 = vld [vmem:[#allocation2 + $0x38] sm:$0xff]  ;;  %v466_v43 = vld [vmem:[#allocation2 + $0x30] sm:$0xff] }
  0x1d   :  { %801 = vmatpush3.msra.mxu1 %v286_v15  ;;  %846 = vmatprep.subr.mxu0 %v475_v34  ;;  %v465_v44 = vld [vmem:[#allocation2 + $0x28] sm:$0xff]  ;;  %v464_v45 = vld [vmem:[#allocation2 + $0x20] sm:$0xff]  ;;  %v463_v46 = vld [vmem:[#allocation2 + $0x18] sm:$0xff] }
  0x1e   :  { %802 = vmatprep.subr.mxu1 %v285_v17  ;;  %847 = vmatpush3.msra.mxu0 %v475_v34  ;;  %v661_v47 = vld [vmem:[%s1135_s2] ss:$0 sm:$0xff] }
  0x1f   :  { %776 = vmatmul.mubr.msk.f32.gmra.mxu0 %vm66_vm0, %v48_v14  ;;  %803 = vmatpush3.msra.mxu1 %v285_v17  ;;  %v460_v34 = vld [vmem:[#allocation2] sm:$0xff] }
  0x20   :  { %778 = vmatprep.mubr.msk.f32.mxu0 %vm66_vm0, %v49_v16  ;;  %804 = vmatprep.subr.mxu1 %v284_v19 }
  0x21   :  { %805 = vmatpush3.msra.mxu1 %v284_v19  ;;  %848 = vmatprep.subr.mxu0 %v474_v35 }
  0x22   :  { %806 = vmatprep.subr.mxu1 %v283_v21  ;;  %849 = vmatpush3.msra.mxu0 %v474_v35  ;;  %v678_v35 = vld [vmem:[%s1137_s4] ss:$0 sm:$0xff] }
  0x23   :  { %779 = vmatmul.mubr.msk.f32.gmra.mxu0 %vm66_vm0, %v50_v18  ;;  %807 = vmatpush3.msra.mxu1 %v283_v21 }
  0x24   :  { %781 = vmatprep.mubr.msk.f32.mxu0 %vm66_vm0, %v51_v20  ;;  %808 = vmatprep.subr.mxu1 %v282_v23 }
  0x25   :  { %809 = vmatpush3.msra.mxu1 %v282_v23  ;;  %850 = vmatprep.subr.mxu0 %v473_v36 }
  0x26   :  { %810 = vmatprep.subr.mxu1 %v281_v25  ;;  %851 = vmatpush3.msra.mxu0 %v473_v36 }
  0x27   :  { %782 = vmatmul.mubr.msk.f32.gmra.mxu0 %vm66_vm0, %v52_v22  ;;  %811 = vmatpush3.msra.mxu1 %v281_v25 }
  0x28   :  { %784 = vmatprep.mubr.msk.f32.mxu0 %vm66_vm0, %v53_v24  ;;  %812 = vmatprep.subr.mxu1 %v280_v27 }
  0x29   :  { %813 = vmatpush3.msra.mxu1 %v280_v27  ;;  %852 = vmatprep.subr.mxu0 %v472_v37 }
  0x2a   :  { %814 = vmatprep.subr.mxu1 %v279_v30  ;;  %853 = vmatpush3.msra.mxu0 %v472_v37 }
  0x2b   :  { %785 = vmatmul.mubr.msk.f32.gmra.mxu0 %vm66_vm0, %v54_v26  ;;  %815 = vmatpush3.msra.mxu1 %v279_v30 }
  0x2c   :  { %787 = vmatprep.mubr.msk.f32.mxu0 %vm66_vm0, %v55_v28  ;;  %816 = vmatprep.subr.mxu1 %v278_v31 }
  0x2d   :  { %817 = vmatpush3.msra.mxu1 %v278_v31  ;;  %854 = vmatprep.subr.mxu0 %v471_v38 }
  0x2e   :  { %818 = vmatprep.subr.mxu1 %v277_v32  ;;  %855 = vmatpush3.msra.mxu0 %v471_v38 }
  0x2f   :  { %788 = vmatmul.mubr.msk.f32.gmra.mxu0 %vm66_vm0, %v56_v29  ;;  %819 = vmatpush3.msra.mxu1 %v277_v32  ;;  %v462_v32 = vld [vmem:[#allocation2 + $0x10] sm:$0xff] }
  0x30   :  { %820 = vmatprep.subr.mxu1 %v276_v33  ;;  %856 = vmatprep.subr.mxu0 %v470_v39 }
  0x31   :  { %821 = vmatpush3.msra.mxu1 %v276_v33  ;;  %857 = vmatpush3.msra.mxu0 %v470_v39  ;;  %v461_v33 = vld [vmem:[#allocation2 + $0x8] sm:$0xff] }
  0x32   :  { %858 = vmatprep.subr.mxu0 %v469_v40 }
  0x33   :  { %859 = vmatpush3.msra.mxu0 %v469_v40 }
  0x34   :  { %860 = vmatprep.subr.mxu0 %v468_v41 }
  0x35   :  { %861 = vmatpush3.msra.mxu0 %v468_v41 }
  0x36   :  { %862 = vmatprep.subr.mxu0 %v467_v42 }
  0x37   :  { %863 = vmatpush3.msra.mxu0 %v467_v42 }
  0x38   :  { %864 = vmatprep.subr.mxu0 %v466_v43 }
  0x39   :  { %865 = vmatpush3.msra.mxu0 %v466_v43 }
  0x3a   :  { %866 = vmatprep.subr.mxu0 %v465_v44 }
  0x3b   :  { %867 = vmatpush3.msra.mxu0 %v465_v44 }
  0x3c   :  { %868 = vmatprep.subr.mxu0 %v464_v45 }
  0x3d   :  { %869 = vmatpush3.msra.mxu0 %v464_v45 }
  0x3e   :  { %870 = vmatprep.subr.mxu0 %v463_v46 }
  0x3f   :  { %871 = vmatpush3.msra.mxu0 %v463_v46 }
  0x40   :  { %872 = vmatprep.subr.mxu0 %v462_v32 }
  0x41   :  { %873 = vmatpush3.msra.mxu0 %v462_v32 }
  0x42   :  { %874 = vmatprep.subr.mxu0 %v461_v33 }
  0x43   :  { %875 = vmatpush3.msra.mxu0 %v461_v33 }
  0x44   :  { %876 = vmatprep.subr.mxu0 %v460_v34 }
  0x45   :  { %877 = vmatpush3.msra.mxu0 %v460_v34 }
  0xd3   :  { %v768_v48 = vpop.f32.mrf.mxu0 }
  0xd4   :  { %v187_v49 = vadd.f32 %v768_v48, %v661_v47 }
  0xd5   :  { %v181_v50 = vpop.f32.mrf.mxu0 }
  0xd6   :  { %v182_v51 = vadd.f32 %v661_v47, %v181_v50  ;;  %v261_v54 = vmax.f32 %v187_v49, 0.0 }
  0xd7   :  { %v771_v52 = vpop.f32.mrf.mxu0 }
  0xd8   :  { %v260_v53 = vmax.f32 %v182_v51, 0.0  ;;  %v197_v55 = vadd.f32 %v771_v52, %v661_v47 }
  0xd9   :  { %v191_v56 = vpop.f32.mrf.mxu0 }
  0xda   :  { %v192_v57 = vadd.f32 %v661_v47, %v191_v56  ;;  %822 = vmatprep.mubr.f32.mxu1 %v260_v53  ;;  %v263_v60 = vmax.f32 %v197_v55, 0.0 }
  0xdb   :  { %v774_v58 = vpop.f32.mrf.mxu0  ;;  %823 = vmatmul.mubr.f32.vlgmr.msra.gmra.mxu1 %v261_v54 }
  0xdc   :  { %v262_v59 = vmax.f32 %v192_v57, 0.0  ;;  %v207_v61 = vadd.f32 %v774_v58, %v661_v47 }
  0xdd   :  { %v201_v62 = vpop.f32.mrf.mxu0 }
  0xde   :  { %v202_v63 = vadd.f32 %v661_v47, %v201_v62  ;;  %825 = vmatprep.mubr.f32.mxu1 %v262_v59  ;;  %v265_v2 = vmax.f32 %v207_v61, 0.0 }
  0xdf   :  { %v777_v0 = vpop.f32.mrf.mxu0  ;;  %826 = vmatmul.mubr.f32.gmra.mxu1 %v263_v60 }
  0xe0   :  { %v264_v1 = vmax.f32 %v202_v63, 0.0  ;;  %v217_v3 = vadd.f32 %v777_v0, %v661_v47 }
  0xe1   :  { %v211_v4 = vpop.f32.mrf.mxu0 }
  0xe2   :  { %v212_v5 = vadd.f32 %v661_v47, %v211_v4  ;;  %828 = vmatprep.mubr.f32.mxu1 %v264_v1  ;;  %v267_v8 = vmax.f32 %v217_v3, 0.0 }
  0xe3   :  { %v780_v6 = vpop.f32.mrf.mxu0  ;;  %829 = vmatmul.mubr.f32.gmra.mxu1 %v265_v2 }
  0xe4   :  { %v266_v7 = vmax.f32 %v212_v5, 0.0  ;;  %v227_v9 = vadd.f32 %v780_v6, %v661_v47 }
  0xe5   :  { %v221_v10 = vpop.f32.mrf.mxu0 }
  0xe6   :  { %v222_v11 = vadd.f32 %v661_v47, %v221_v10  ;;  %831 = vmatprep.mubr.f32.mxu1 %v266_v7  ;;  %v269_v14 = vmax.f32 %v227_v9, 0.0 }
  0xe7   :  { %v783_v12 = vpop.f32.mrf.mxu0  ;;  %832 = vmatmul.mubr.f32.gmra.mxu1 %v267_v8 }
  0xe8   :  { %v268_v13 = vmax.f32 %v222_v11, 0.0  ;;  %v237_v15 = vadd.f32 %v783_v12, %v661_v47 }
  0xe9   :  { %v231_v16 = vpop.f32.mrf.mxu0 }
  0xea   :  { %v232_v17 = vadd.f32 %v661_v47, %v231_v16  ;;  %834 = vmatprep.mubr.f32.mxu1 %v268_v13  ;;  %v271_v20 = vmax.f32 %v237_v15, 0.0 }
  0xeb   :  { %v786_v18 = vpop.f32.mrf.mxu0  ;;  %835 = vmatmul.mubr.f32.gmra.mxu1 %v269_v14 }
  0xec   :  { %v270_v19 = vmax.f32 %v232_v17, 0.0  ;;  %v247_v21 = vadd.f32 %v786_v18, %v661_v47 }
  0xed   :  { %v241_v22 = vpop.f32.mrf.mxu0 }
  0xee   :  { %v242_v23 = vadd.f32 %v661_v47, %v241_v22  ;;  %837 = vmatprep.mubr.f32.mxu1 %v270_v19  ;;  %v273_v26 = vmax.f32 %v247_v21, 0.0 }
  0xef   :  { %v789_v24 = vpop.f32.mrf.mxu0  ;;  %838 = vmatmul.mubr.f32.gmra.mxu1 %v271_v20  ;;  %v679_v20 = vld [vmem:[%s1139_s6] ss:$0 sm:$0xff]  ;;  %s953_s6 = smov [#allocation5]  }
  0xf0   :  { %v272_v25 = vmax.f32 %v242_v23, 0.0  ;;  %v257_v27 = vadd.f32 %v789_v24, %v661_v47  ;;  %s649_s9 = sshll.u32 %s953_s6, 4  ;;  %s650_s9 = int_to_ptr.vmem [resolvable:$true] %s649_s9 }
  0xf1   :  { %v251_v28 = vpop.f32.mrf.mxu0  ;;  %s926_s10 = scalar_lea.vmem %s650_s9, 2048  ;;  %p931_p6 = scmp.lt.s32.totalorder %s650_s9, %s650_s9 }
  0xf2   :  { %v252_v29 = vadd.f32 %v661_v47, %v251_v28  ;;  %840 = vmatprep.mubr.f32.mxu1 %v272_v25  ;;  %v275_v31 = vmax.f32 %v257_v27, 0.0  ;;  %p927_p5 = scmp.ne.s32.totalorder %s650_s9, %s926_s10  ;;  %p932_p7 = scmp.lt.s32.totalorder %s926_s10, %s926_s10 }
  0xf3   :  { %841 = vmatmul.mubr.f32.gmra.mxu1 %v273_v26 }
  0xf4   :  { %v274_v30 = vmax.f32 %v252_v29, 0.0  ;;  %p933_p8 = por %p932_p7, %p931_p6 }
  0xf6   :  { %843 = vmatprep.mubr.f32.mxu1 %v274_v30  ;;  %p934_p9 = pnand %p933_p8, %p927_p5 }
  0xf7   :  { %844 = vmatmul.mubr.f32.gmra.mxu1 %v275_v31 }
 0x19b   :  { %v824_v36 = vpop.f32.mrf.mxu1 }
 0x19c   :  { %v371_v37 = vadd.f32 %v824_v36, %v678_v35 }
 0x19d   :  { %v365_v38 = vpop.f32.mrf.mxu1 }
 0x19e   :  { %v366_v39 = vadd.f32 %v678_v35, %v365_v38  ;;  %v445_v42 = vmax.f32 %v371_v37, 0.0 }
 0x19f   :  { %v827_v40 = vpop.f32.mrf.mxu1 }
 0x1a0   :  { %v444_v41 = vmax.f32 %v366_v39, 0.0  ;;  %v381_v43 = vadd.f32 %v827_v40, %v678_v35 }
 0x1a1   :  { %v375_v44 = vpop.f32.mrf.mxu1 }
 0x1a2   :  { %v376_v45 = vadd.f32 %v678_v35, %v375_v44  ;;  %878 = vmatprep.mubr.f32.mxu0 %v444_v41  ;;  %v447_v48 = vmax.f32 %v381_v43, 0.0 }
 0x1a3   :  { %v830_v46 = vpop.f32.mrf.mxu1  ;;  %879 = vmatmul.mubr.f32.vlgmr.msra.gmra.mxu0 %v445_v42 }
 0x1a4   :  { %v446_v47 = vmax.f32 %v376_v45, 0.0  ;;  %v391_v49 = vadd.f32 %v830_v46, %v678_v35 }
 0x1a5   :  { %v385_v50 = vpop.f32.mrf.mxu1 }
 0x1a6   :  { %v386_v51 = vadd.f32 %v678_v35, %v385_v50  ;;  %881 = vmatprep.mubr.f32.mxu0 %v446_v47  ;;  %v449_v54 = vmax.f32 %v391_v49, 0.0 }
 0x1a7   :  { %v833_v52 = vpop.f32.mrf.mxu1  ;;  %882 = vmatmul.mubr.f32.gmra.mxu0 %v447_v48 }
 0x1a8   :  { %v448_v53 = vmax.f32 %v386_v51, 0.0  ;;  %v401_v55 = vadd.f32 %v833_v52, %v678_v35 }
 0x1a9   :  { %v395_v56 = vpop.f32.mrf.mxu1 }
 0x1aa   :  { %v396_v57 = vadd.f32 %v678_v35, %v395_v56  ;;  %884 = vmatprep.mubr.f32.mxu0 %v448_v53  ;;  %v451_v60 = vmax.f32 %v401_v55, 0.0 }
 0x1ab   :  { %v836_v58 = vpop.f32.mrf.mxu1  ;;  %885 = vmatmul.mubr.f32.gmra.mxu0 %v449_v54 }
 0x1ac   :  { %v450_v59 = vmax.f32 %v396_v57, 0.0  ;;  %v411_v61 = vadd.f32 %v836_v58, %v678_v35 }
 0x1ad   :  { %v405_v62 = vpop.f32.mrf.mxu1 }
 0x1ae   :  { %v406_v63 = vadd.f32 %v678_v35, %v405_v62  ;;  %887 = vmatprep.mubr.f32.mxu0 %v450_v59  ;;  %v453_v2 = vmax.f32 %v411_v61, 0.0 }
 0x1af   :  { %v839_v0 = vpop.f32.mrf.mxu1  ;;  %888 = vmatmul.mubr.f32.gmra.mxu0 %v451_v60 }
 0x1b0   :  { %v452_v1 = vmax.f32 %v406_v63, 0.0  ;;  %v421_v3 = vadd.f32 %v839_v0, %v678_v35 }
 0x1b1   :  { %v415_v4 = vpop.f32.mrf.mxu1 }
 0x1b2   :  { %v416_v5 = vadd.f32 %v678_v35, %v415_v4  ;;  %890 = vmatprep.mubr.f32.mxu0 %v452_v1  ;;  %v455_v8 = vmax.f32 %v421_v3, 0.0 }
 0x1b3   :  { %v842_v6 = vpop.f32.mrf.mxu1  ;;  %891 = vmatmul.mubr.f32.gmra.mxu0 %v453_v2 }
 0x1b4   :  { %v454_v7 = vmax.f32 %v416_v5, 0.0  ;;  %v431_v9 = vadd.f32 %v842_v6, %v678_v35 }
 0x1b5   :  { %v425_v10 = vpop.f32.mrf.mxu1 }
 0x1b6   :  { %v426_v11 = vadd.f32 %v678_v35, %v425_v10  ;;  %893 = vmatprep.mubr.f32.mxu0 %v454_v7  ;;  %v457_v14 = vmax.f32 %v431_v9, 0.0 }
 0x1b7   :  { %v845_v12 = vpop.f32.mrf.mxu1  ;;  %894 = vmatmul.mubr.f32.gmra.mxu0 %v455_v8 }
 0x1b8   :  { %v456_v13 = vmax.f32 %v426_v11, 0.0  ;;  %v441_v15 = vadd.f32 %v845_v12, %v678_v35 }
 0x1b9   :  { %v435_v16 = vpop.f32.mrf.mxu1 }
 0x1ba   :  { %v436_v17 = vadd.f32 %v678_v35, %v435_v16  ;;  %896 = vmatprep.mubr.f32.mxu0 %v456_v13  ;;  %v459_v19 = vmax.f32 %v441_v15, 0.0 }
 0x1bb   :  { %897 = vmatmul.mubr.f32.gmra.mxu0 %v457_v14 }
 0x1bc   :  { %v458_v18 = vmax.f32 %v436_v17, 0.0 }
 0x1be   :  { %899 = vmatprep.mubr.f32.mxu0 %v458_v18 }
 0x1bf   :  { %900 = vmatmul.mubr.f32.gmra.mxu0 %v459_v19 }
 0x263   :  { %v880_v21 = vpop.f32.mrf.mxu0 }
 0x264   :  { %v555_v22 = vadd.f32 %v880_v21, %v679_v20 }
 0x265   :  { %v549_v23 = vpop.f32.mrf.mxu0 }
 0x266   :  { %629 = vst [vmem:[#allocation5 + $0x8] sm:$0xff] %v555_v22  ;;  %v550_v24 = vadd.f32 %v679_v20, %v549_v23 }
 0x267   :  { %v883_v25 = vpop.f32.mrf.mxu0 }
 0x268   :  { %628 = vst [vmem:[#allocation5] sm:$0xff] %v550_v24  ;;  %v565_v26 = vadd.f32 %v883_v25, %v679_v20 }
 0x269   :  { %v559_v27 = vpop.f32.mrf.mxu0 }
 0x26a   :  { %631 = vst [vmem:[#allocation5 + $0x18] sm:$0xff] %v565_v26  ;;  %v560_v28 = vadd.f32 %v679_v20, %v559_v27 }
 0x26b   :  { %v886_v29 = vpop.f32.mrf.mxu0 }
 0x26c   :  { %630 = vst [vmem:[#allocation5 + $0x10] sm:$0xff] %v560_v28  ;;  %v575_v30 = vadd.f32 %v886_v29, %v679_v20 }
 0x26d   :  { %v569_v31 = vpop.f32.mrf.mxu0 }
 0x26e   :  { %633 = vst [vmem:[#allocation5 + $0x28] sm:$0xff] %v575_v30  ;;  %v570_v32 = vadd.f32 %v679_v20, %v569_v31 }
 0x26f   :  { %v889_v33 = vpop.f32.mrf.mxu0 }
 0x270   :  { %632 = vst [vmem:[#allocation5 + $0x20] sm:$0xff] %v570_v32  ;;  %v585_v34 = vadd.f32 %v889_v33, %v679_v20 }
 0x271   :  { %v579_v35 = vpop.f32.mrf.mxu0 }
 0x272   :  { %635 = vst [vmem:[#allocation5 + $0x38] sm:$0xff] %v585_v34  ;;  %v580_v36 = vadd.f32 %v679_v20, %v579_v35 }
 0x273   :  { %v892_v37 = vpop.f32.mrf.mxu0 }
 0x274   :  { %634 = vst [vmem:[#allocation5 + $0x30] sm:$0xff] %v580_v36  ;;  %v595_v38 = vadd.f32 %v892_v37, %v679_v20 }
 0x275   :  { %v589_v39 = vpop.f32.mrf.mxu0 }
 0x276   :  { %637 = vst [vmem:[#allocation5 + $0x48] sm:$0xff] %v595_v38  ;;  %v590_v40 = vadd.f32 %v679_v20, %v589_v39 }
 0x277   :  { %v895_v41 = vpop.f32.mrf.mxu0 }
 0x278   :  { %636 = vst [vmem:[#allocation5 + $0x40] sm:$0xff] %v590_v40  ;;  %v605_v42 = vadd.f32 %v895_v41, %v679_v20 }
 0x279   :  { %v599_v43 = vpop.f32.mrf.mxu0 }
 0x27a   :  { %639 = vst [vmem:[#allocation5 + $0x58] sm:$0xff] %v605_v42  ;;  %v600_v44 = vadd.f32 %v679_v20, %v599_v43 }
 0x27b   :  { %v898_v45 = vpop.f32.mrf.mxu0 }
 0x27c   :  { %638 = vst [vmem:[#allocation5 + $0x50] sm:$0xff] %v600_v44  ;;  %v615_v46 = vadd.f32 %v898_v45, %v679_v20 }
 0x27d   :  { %v609_v47 = vpop.f32.mrf.mxu0 }
 0x27e   :  { %641 = vst [vmem:[#allocation5 + $0x68] sm:$0xff] %v615_v46  ;;  %v610_v48 = vadd.f32 %v679_v20, %v609_v47 }
 0x27f   :  { %v901_v49 = vpop.f32.mrf.mxu0 }
 0x280   :  { %640 = vst [vmem:[#allocation5 + $0x60] sm:$0xff] %v610_v48  ;;  %v625_v50 = vadd.f32 %v901_v49, %v679_v20 }
 0x281   :  { %v619_v51 = vpop.f32.mrf.mxu0 }
 0x282   :  { %643 = vst [vmem:[#allocation5 + $0x78] sm:$0xff] %v625_v50  ;;  %v620_v52 = vadd.f32 %v679_v20, %v619_v51 }
 0x284   :  { %642 = vst [vmem:[#allocation5 + $0x70] sm:$0xff] %v620_v52 }
 0x285   :  { %937 = shalt.err (!%p934_p9)
}
 0x286   :  { %655 = dma.vmem_to_hbm [thread:$0]  %s650_s9, 2048, %s1140_s7, [#allocation4], %s951_s27, %s951_s27, %s952_s28  }
 0x287   :  { %948 = dma.done.wait [#allocation4], 2048  }
 0x288   :  { %949 = vsyncadd [#allocation4], 4294965248 }
 0x289   :  { %659 = vsyncpa [#allocation3], 1 }
 0x28a   :  { %660 = vsyncpa [#allocation4], 1 }

</bundles_post_ra>
